<compile_context>
chip_gen: v7x
topology: tpu7x:2x2x1
jax: 0.10.0
libtpu: 0.0.40
codegen_flags: <defaults>
</compile_context>

<pallas_src>
import functools

import jax
import jax.numpy as jnp
from jax.experimental import pallas as pl
from jax.experimental.pallas import tpu as pltpu


def _self_attn_sum_kernel(x_ref, wk_ref, wo_ref, wv_ref, wkeys_ref, *, hidden_is_one):
    """One batch-tile of the whole problem.

    x_ref     : (TB, L, D)   input tile
    wk_ref    : (D, H)       key_maker weight (resident; constant index_map)
    wo_ref    : (1, H)       key_output weight as a row
    wv_ref    : (TB, D)      output: weighted_values
    wkeys_ref : (TB, L)      output: weighted_keys (lane-dense; wrapper adds the
                             trailing singleton dim)
    """
    x = x_ref[...]                                   # (TB, L, D), native dtype
    TB, L, D = x.shape

    # Flat row view for the MXU matmul.  With L a multiple of the sublane count (8)
    # this regrouping of the two leading dims is layout-preserving (no relayout copy).
    x2 = x.reshape(TB * L, D)

    # k_d = relu(key_maker(x))  -> single MXU matmul over all TB*L rows, f32 accumulate.
    k_d = jnp.dot(x2, wk_ref[...], preferred_element_type=jnp.float32)   # (TB*L, H)
    k_d = jnp.maximum(k_d, 0.0)                                          # ReLU

    if hidden_is_one:
        # hidden_dim == 1: the (single-column) activated keys are the scores directly.
        scores = k_d                                                     # (TB*L, 1)
    else:
        # key_output: (H -> 1) as VPU multiply + lane reduce (not an N=1 MXU matmul).
        scores = jnp.sum(k_d * wo_ref[...].astype(jnp.float32),
                         axis=-1, keepdims=True)                         # (TB*L, 1)

    # Regroup rows into (TB, L, 1); with L % 8 == 0 this is layout-preserving too.
    s3 = scores.reshape(TB, L, 1)

    # Numerically stable softmax over the sequence axis (dim=1 in the PyTorch module).
    m = jnp.max(s3, axis=1, keepdims=True)
    e = jnp.exp(s3 - m)
    denom = jnp.sum(e, axis=1, keepdims=True)
    w3 = e * pl.reciprocal(denom, approx=True)                           # (TB, L, 1)

    # weighted_values = sum_L (weighted_keys * input_embed), accumulated in f32.
    wv = jnp.sum(w3 * x.astype(jnp.float32), axis=1)                     # (TB, D)
    wv_ref[...] = wv.astype(wv_ref.dtype)

    # Lane-dense (TB, L) store for the attention weights.
    wkeys_ref[...] = w3.reshape(TB, L).astype(wkeys_ref.dtype)


def _pick_block_b(B, L, D, itemsize):
    """Batch-tile size: big enough to hide HBM latency, small enough for v7x VMEM."""
    budget = 8 * 1024 * 1024               # conservative double-buffered input budget
    per_row = 2 * L * D * itemsize         # 2x for double buffering
    tb = max(1, budget // max(per_row, 1))
    if tb >= B:
        return B
    return max(8, (tb // 8) * 8)           # keep block second-to-last dim 8-aligned


def self_attentive_sum(input_embed, w_key, w_out, hidden_dim, *, block_b=None):
    """Pallas wrapper.

    input_embed: (B, L, D); w_key: (D, H); w_out: (H, 1).
    Returns (weighted_values (B, D), weighted_keys (B, L, 1)).
    """
    B, L, D = input_embed.shape
    H = w_key.shape[1]
    assert H == hidden_dim
    assert w_out.shape == (H, 1)

    itemsize = jnp.dtype(input_embed.dtype).itemsize
    tb = block_b if block_b is not None else _pick_block_b(B, L, D, itemsize)
    tb = min(tb, B)
    grid = (pl.cdiv(B, tb),)

    # Present W_out as a (1, H) row so the kernel can do a broadcast-mul + lane reduce.
    wo_row = w_out.reshape(1, H)

    kernel = functools.partial(_self_attn_sum_kernel, hidden_is_one=(hidden_dim == 1))

    # Explicit VMEM limit: double-buffered in/out tiles + weights + slack.
    est = (2 * (tb * L * D + tb * D + tb * L) * itemsize
           + (D * H + H) * itemsize + (1 << 20))
    vmem_limit = int(min(max(4 * est, 16 << 20), 48 << 20))

    wv, wkeys2d = pl.pallas_call(
        kernel,
        out_shape=(
            jax.ShapeDtypeStruct((B, D), input_embed.dtype),   # weighted_values
            jax.ShapeDtypeStruct((B, L), input_embed.dtype),   # weighted_keys (lane-dense)
        ),
        grid=grid,
        in_specs=[
            pl.BlockSpec((tb, L, D), lambda i: (i, 0, 0)),     # x tile
            pl.BlockSpec((D, H), lambda i: (0, 0)),            # W_key (fetched once)
            pl.BlockSpec((1, H), lambda i: (0, 0)),            # W_out row (fetched once)
        ],
        out_specs=(
            pl.BlockSpec((tb, D), lambda i: (i, 0)),
            pl.BlockSpec((tb, L), lambda i: (i, 0)),
        ),
        compiler_params=pltpu.CompilerParams(
            dimension_semantics=("parallel",),                 # megacore batch split on v7x
            vmem_limit_bytes=vmem_limit,
        ),
    )(input_embed, w_key, wo_row)

    # Restore the (B, L, 1) shape the PyTorch module returns (free metadata reshape).
    return wv, wkeys2d[:, :, None]


def _reference(input_embed, w_key, w_out, hidden_dim):
    """Pure-JAX reference mirroring the PyTorch forward."""
    B, L, D = input_embed.shape
    x2 = input_embed.reshape(-1, D)
    k_d = jnp.maximum(x2 @ w_key, 0.0)
    if hidden_dim == 1:
        k = k_d.reshape(B, L)
    else:
        k = (k_d @ w_out).reshape(B, L)
    w = jax.nn.softmax(k, axis=1)
    wkeys = w[:, :, None]
    wv = jnp.sum(wkeys * input_embed, axis=1)
    return wv, wkeys


if __name__ == "__main__":
    # Small shapes consistent with the module: batch=2, seq len=8,
    # output_dim (D) = 32, hidden_dim (H) = 16.
    B, L, D, H = 2, 8, 32, 16

    key = jax.random.PRNGKey(0)
    kx, kw1, kw2 = jax.random.split(key, 3)

    x = jax.random.normal(kx, (B, L, D), dtype=jnp.float32)
    # Deterministic parameter init (synthetic; matches nn.Linear shapes, pre-transposed).
    w_key = (jax.random.normal(kw1, (D, H), dtype=jnp.float32) / jnp.sqrt(D)).astype(jnp.float32)
    w_out = (jax.random.normal(kw2, (H, 1), dtype=jnp.float32) / jnp.sqrt(H)).astype(jnp.float32)

    wv, wkeys = self_attentive_sum(x, w_key, w_out, hidden_dim=H)
    wv = jax.block_until_ready(wv)
    wkeys = jax.block_until_ready(wkeys)

    # Correctness check against the pure-JAX reference.  Tolerance accounts for the
    # approximate (EUP vrcp) reciprocal in the softmax normalization (~1e-3 relative).
    wv_ref, wkeys_ref = _reference(x, w_key, w_out, hidden_dim=H)
    assert wv.shape == (B, D) and wkeys.shape == (B, L, 1)
    assert jnp.allclose(wv, wv_ref, atol=2e-3, rtol=2e-3)
    assert jnp.allclose(wkeys, wkeys_ref, atol=2e-3, rtol=2e-3)

    print("KERNEL_OK")
</pallas_src>

<mosaic_0001>
module attributes {stable_mosaic.version = 11 : i64} {
  func.func @_self_attn_sum_kernel(%arg0: i32, %arg1: memref<2x8x32xf32, #tpu.memory_space<vmem>>, %arg2: memref<32x16xf32, #tpu.memory_space<vmem>>, %arg3: memref<1x16xf32, #tpu.memory_space<vmem>>, %arg4: memref<2x32xf32, #tpu.memory_space<vmem>>, %arg5: memref<2x8xf32, #tpu.memory_space<vmem>>) attributes {dimension_semantics = [#tpu.dimension_semantics<parallel>], iteration_bounds = array<i64: 1>, scalar_prefetch = 0 : i64, scratch_operands = 0 : i64, tpu.core_type = #tpu.core_type<tc>, window_params = [{transform_indices = @transform_0, window_bounds = array<i64: 2, 8, 32>}, {pipeline_mode = #tpu.pipeline_mode<synchronous>, transform_indices = @transform_1, window_bounds = array<i64: 32, 16>}, {pipeline_mode = #tpu.pipeline_mode<synchronous>, transform_indices = @transform_2, window_bounds = array<i64: 1, 16>}, {transform_indices = @transform_3, window_bounds = array<i64: 2, 32>}, {transform_indices = @transform_4, window_bounds = array<i64: 2, 8>}]} {
    %c0 = arith.constant 0 : index
    %c0_0 = arith.constant 0 : index
    %c0_1 = arith.constant 0 : index
    %0 = vector.load %arg1[%c0, %c0_0, %c0_1] : memref<2x8x32xf32, #tpu.memory_space<vmem>>, vector<2x8x32xf32>
    %1 = vector.shape_cast %0 : vector<2x8x32xf32> to vector<16x32xf32>
    %c0_2 = arith.constant 0 : index
    %c0_3 = arith.constant 0 : index
    %2 = vector.load %arg2[%c0_2, %c0_3] : memref<32x16xf32, #tpu.memory_space<vmem>>, vector<32x16xf32>
    %cst = arith.constant dense<0.000000e+00> : vector<16x16xf32>
    %3 = tpu.matmul %1, %2, %cst {dimension_numbers = #tpu.dot_dimension_numbers<[1], [0], [0], [1], [0, 0, 1, 1], [], []>} : vector<16x32xf32>, vector<32x16xf32>, vector<16x16xf32> -> vector<16x16xf32>
    %cst_4 = arith.constant 0.000000e+00 : f32
    %4 = vector.broadcast %cst_4 : f32 to vector<16x16xf32>
    %5 = arith.maximumf %3, %4 : vector<16x16xf32>
    %c0_5 = arith.constant 0 : index
    %c0_6 = arith.constant 0 : index
    %6 = vector.load %arg3[%c0_5, %c0_6] : memref<1x16xf32, #tpu.memory_space<vmem>>, vector<1x16xf32>
    %7 = vector.broadcast %6 : vector<1x16xf32> to vector<16x16xf32>
    %8 = arith.mulf %5, %7 : vector<16x16xf32>
    %cst_7 = arith.constant dense<0.000000e+00> : vector<16xf32>
    %9 = vector.multi_reduction <add>, %8, %cst_7 [1] : vector<16x16xf32> to vector<16xf32>
    %10 = vector.shape_cast %9 : vector<16xf32> to vector<16x1xf32>
    %11 = vector.shape_cast %10 : vector<16x1xf32> to vector<2x8x1xf32>
    %cst_8 = arith.constant dense<0xFF800000> : vector<2x1xf32>
    %12 = vector.multi_reduction <maximumf>, %11, %cst_8 [1] : vector<2x8x1xf32> to vector<2x1xf32>
    %13 = vector.shape_cast %12 : vector<2x1xf32> to vector<2x1x1xf32>
    %14 = vector.broadcast %13 : vector<2x1x1xf32> to vector<2x8x1xf32>
    %15 = arith.subf %11, %14 : vector<2x8x1xf32>
    %16 = math.exp %15 : vector<2x8x1xf32>
    %cst_9 = arith.constant dense<0.000000e+00> : vector<2x1xf32>
    %17 = vector.multi_reduction <add>, %16, %cst_9 [1] : vector<2x8x1xf32> to vector<2x1xf32>
    %18 = vector.shape_cast %17 : vector<2x1xf32> to vector<2x1x1xf32>
    %19 = tpu.reciprocal %18 {approx = true} : vector<2x1x1xf32> -> vector<2x1x1xf32>
    %20 = vector.broadcast %19 : vector<2x1x1xf32> to vector<2x8x1xf32>
    %21 = arith.mulf %16, %20 : vector<2x8x1xf32>
    %22 = vector.broadcast %21 : vector<2x8x1xf32> to vector<2x8x32xf32>
    %23 = arith.mulf %22, %0 : vector<2x8x32xf32>
    %cst_10 = arith.constant dense<0.000000e+00> : vector<2x32xf32>
    %24 = vector.multi_reduction <add>, %23, %cst_10 [1] : vector<2x8x32xf32> to vector<2x32xf32>
    %c0_11 = arith.constant 0 : index
    %c0_12 = arith.constant 0 : index
    %25 = vector.load %arg4[%c0_11, %c0_12] : memref<2x32xf32, #tpu.memory_space<vmem>>, vector<2x32xf32>
    tpu.vector_store %arg4[%c0_11, %c0_12], %24 {strides = array<i32>} : memref<2x32xf32, #tpu.memory_space<vmem>>, vector<2x32xf32>,
    %26 = vector.shape_cast %21 : vector<2x8x1xf32> to vector<2x8xf32>
    %c0_13 = arith.constant 0 : index
    %c0_14 = arith.constant 0 : index
    %27 = vector.load %arg5[%c0_13, %c0_14] : memref<2x8xf32, #tpu.memory_space<vmem>>, vector<2x8xf32>
    tpu.vector_store %arg5[%c0_13, %c0_14], %26 {strides = array<i32>} : memref<2x8xf32, #tpu.memory_space<vmem>>, vector<2x8xf32>,
    return
  }
  func.func @transform_0(%arg0: i32) -> (i32, i32, i32) {
    %c0_i32 = arith.constant 0 : i32
    %c0_i32_0 = arith.constant 0 : i32
    %c0_i32_1 = arith.constant 0 : i32
    return %arg0, %c0_i32, %c0_i32_0 : i32, i32, i32
  }
  func.func @transform_1(%arg0: i32) -> (i32, i32) {
    %c0_i32 = arith.constant 0 : i32
    %c0_i32_0 = arith.constant 0 : i32
    %c0_i32_1 = arith.constant 0 : i32
    return %c0_i32, %c0_i32_0 : i32, i32
  }
  func.func @transform_2(%arg0: i32) -> (i32, i32) {
    %c0_i32 = arith.constant 0 : i32
    %c0_i32_0 = arith.constant 0 : i32
    %c0_i32_1 = arith.constant 0 : i32
    return %c0_i32, %c0_i32_0 : i32, i32
  }
  func.func @transform_3(%arg0: i32) -> (i32, i32) {
    %c0_i32 = arith.constant 0 : i32
    %c0_i32_0 = arith.constant 0 : i32
    return %arg0, %c0_i32 : i32, i32
  }
  func.func @transform_4(%arg0: i32) -> (i32, i32) {
    %c0_i32 = arith.constant 0 : i32
    %c0_i32_0 = arith.constant 0 : i32
    return %arg0, %c0_i32 : i32, i32
  }
}

</mosaic_0001>

<bundles_post_ra>
// kernel: tpu_custom_call.1
= control target key start
LH: loop header
LB: loop body
LE: loop exit
PB: predicated region body
PF: predicated region fallthrough
CT: control target
= control target key end

     0   :  { %10 = vsyncpa [#allocation3], 0  ;;  %vm24_vm0 = vcmask 261120   ;;  %s397_s0 = inlined_call_operand.vmem [shape: f32[2,8,32], index: 0, kind: input, shape index: {}]   ;;  %s398_s1 = inlined_call_operand.vmem [shape: f32[32,16], index: 1, kind: input, shape index: {}]   ;;  %s399_s2 = inlined_call_operand.vmem [shape: f32[1,16], index: 2, kind: input, shape index: {}]   ;;  %s400_s3 = inlined_call_operand.hbm [shape: f32[2,32], index: 3, kind: output, shape index: {0}]   ;;  %s401_s4 = inlined_call_operand.hbm [shape: f32[2,8], index: 4, kind: output, shape index: {1}]  }
   0x1   :  { %v20_v0 = vld [vmem:[%s398_s1] sm:$0xff]  ;;  %v21_v1 = vld [vmem:[%s398_s1 + $0x8] sm:$0xff]  ;;  %v22_v2 = vld [vmem:[%s398_s1 + $0x10] sm:$0xff] }
   0x2   :  { %v245_v3 = vpack.c.bf16 %v21_v1, %v20_v0  ;;  %v23_v4 = vld [vmem:[%s398_s1 + $0x18] sm:$0xff]  ;;  %v353_v5 = vld [vmem:[%s397_s0] sm:$0xff] }
   0x3   :  { %v249_v6 = vpack.c.bf16 %v23_v4, %v22_v2  ;;  %242 = vmatprep.mubr.msk.f32.mxu0 %vm24_vm0, %v353_v5 }
   0x4   :  { %11 = vsyncpa [#allocation5], 0  ;;  %246 = vmatprep.subr.bf16.mxu0 %v245_v3  ;;  %v360_v7 = vld [vmem:[%s397_s0 + $0x8] sm:$0xff]  ;;  %v227_v10 = vld [vmem:[%s399_s2] ss:$0 sm:$0xff]  ;;  %vm117_vm1 = vcmask 130048   ;;  %v183_v49 = vlaneseq }
   0x5   :  { %248 = vmatpush3.bf16.msra.mxu0 %v245_v3  ;;  %s311_s0 = smov [#allocation4]   ;;  %vm176_vm2 = vcmask 1041409   ;;  %vm195_vm3 = vcmask 58368  }
   0x6   :  { %250 = vmatprep.subr.bf16.mxu0 %v249_v6  ;;  %v184_v50 = vand.u32 127, %v183_v49  ;;  %v186_v51 = vshrl.u32 %v183_v49, 7  ;;  %s213_s2 = sshll.u32 %s311_s0, 4  ;;  %s214_s2 = int_to_ptr.vmem [resolvable:$true] %s213_s2 }
   0x7   :  { %s263_s28 = scalar_lea.vmem %s214_s2, 32  ;;  %p268_p1 = scmp.lt.s32.totalorder %s214_s2, %s214_s2 }
   0x8   :  { %v187_v55 = vsub.s32 %v184_v50, %v186_v51  ;;  %p264_p0 = scmp.ne.s32.totalorder %s214_s2, %s263_s28  ;;  %p269_p2 = scmp.lt.s32.totalorder %s263_s28, %s263_s28 }
   0x9   :  { %252 = vmatpush3.bf16.msra.mxu0 %v249_v6 }
   0xa   :  { %p270_p3 = por %p269_p2, %p268_p1 }
   0xc   :  { %243 = vmatmul.mubr.msk.f32.vlgmr.msra.gmra.mrb[0].mxu0 %vm24_vm0, %v360_v7  ;;  %p271_p4 = pnand %p270_p3, %p264_p0 }
  0xdf   :  { %v244_v8 = vpop.f32.mrb[0].mxu0 }
  0xe0   :  { %v97_v9 = vpop.f32.mrb[1].mxu0  ;;  %v107_v11 = vmax.f32 %v244_v8, 0.0 }
  0xe1   :  { %v106_v12 = vmax.f32 %v97_v9, 0.0 }
  0xe2   :  { %v116_v15 = vmul.f32 %v227_v10, %v107_v11 }
  0xe3   :  { %v115_v13 = vmul.f32 %v227_v10, %v106_v12 }
  0xe4   :  { %v121_v16 = vsel %vm117_vm1, %v116_v15, 0.0 }
  0xe5   :  { %v118_v14 = vsel %vm117_vm1, %v115_v13, 0.0 }
  0xe6   :  { %119 = vadd.xlane.f32.xlu0 %v118_v14 }
  0xea   :  { %122 = vadd.xlane.f32.xlu0 %v121_v16 }
 0x173   :  { %v120_v17 = vpop.xlane.xlu0 %119 }
 0x174   :  { %v124_v18 = vrot.slane %v120_v17, 4 }
 0x176   :  { %v125_v19 = vmax.f32 %v120_v17, %v124_v18 }
 0x177   :  { %v123_v20 = vpop.xlane.xlu0 %122 }
 0x178   :  { %v126_v21 = vrot.slane %v125_v19, 2  ;;  %v130_v22 = vrot.slane %v123_v20, 4 }
 0x17a   :  { %v127_v23 = vmax.f32 %v125_v19, %v126_v21  ;;  %v131_v24 = vmax.f32 %v123_v20, %v130_v22 }
 0x17c   :  { %v128_v25 = vrot.slane %v127_v23, 1  ;;  %v132_v26 = vrot.slane %v131_v24, 2 }
 0x17e   :  { %v129_v27 = vmax.f32 %v127_v23, %v128_v25  ;;  %v133_v28 = vmax.f32 %v131_v24, %v132_v26 }
 0x180   :  { %v136_v29 = vsub.f32 %v120_v17, %v129_v27  ;;  %v134_v30 = vrot.slane %v133_v28, 1 }
 0x182   :  { %v138_v31 = vmul.f32 1.442695, %v136_v29  ;;  %v135_v32 = vmax.f32 %v133_v28, %v134_v30 }
 0x184   :  { %255 = vpow2.f32 %v138_v31  ;;  %v137_v33 = vsub.f32 %v123_v20, %v135_v32 }
 0x186   :  { %v140_v34 = vmul.f32 1.442695, %v137_v33 }
 0x188   :  { %257 = vpow2.f32 %v140_v34 }
 0x18e   :  { %v256_v35 = vpop.eup %255 }
 0x18f   :  { %v142_v36 = vrot.slane %v256_v35, 4 }
 0x191   :  { %v143_v37 = vadd.f32 %v256_v35, %v142_v36 }
 0x192   :  { %v258_v38 = vpop.eup %257 }
 0x193   :  { %v148_v39 = vrot.slane %v258_v38, 4  ;;  %v144_v40 = vrot.slane %v143_v37, 2 }
 0x195   :  { %v149_v41 = vadd.f32 %v258_v38, %v148_v39  ;;  %v145_v42 = vadd.f32 %v144_v40, %v143_v37 }
 0x197   :  { %v150_v43 = vrot.slane %v149_v41, 2  ;;  %v146_v44 = vrot.slane %v145_v42, 1 }
 0x199   :  { %v147_v45 = vadd.f32 %v146_v44, %v145_v42  ;;  %v151_v46 = vadd.f32 %v150_v43, %v149_v41 }
 0x19b   :  { %v152_v47 = vrot.slane %v151_v46, 1  ;;  %259 = vrcp.f32 %v147_v45 }
 0x19d   :  { %v153_v48 = vadd.f32 %v152_v47, %v151_v46 }
 0x19f   :  { %261 = vrcp.f32 %v153_v48 }
 0x1a5   :  { %v260_v52 = vpop.eup %259 }
 0x1a6   :  { %v156_v53 = vmul.f32 %v260_v52, %v256_v35 }
 0x1a8   :  { %v158_v54 = vmul.f32 %v156_v53, %v353_v5  ;;  %v188_v61 = vrot.slane %v156_v53, %v187_v55 }
 0x1a9   :  { %v262_v56 = vpop.eup %261 }
 0x1aa   :  { %v157_v57 = vmul.f32 %v262_v56, %v258_v38  ;;  %v160_v58 = vsel %vm24_vm0, %v158_v54, 0.0 }
 0x1ab   :  { %v161_v59 = vrot.slane %v160_v58, 4 }
 0x1ac   :  { %v159_v60 = vmul.f32 %v157_v57, %v360_v7  ;;  %v192_v62 = vrot.slane %v157_v57, %v187_v55 }
 0x1ad   :  { %v162_v63 = vadd.f32 %v161_v59, %v160_v58 }
 0x1ae   :  { %v167_v0 = vsel %vm24_vm0, %v159_v60, 0.0  ;;  %v193_v1 = vsel %vm176_vm2, %v192_v62, %v188_v61 }
 0x1af   :  { %v163_v2 = vrot.slane %v162_v63, 2  ;;  %v168_v3 = vrot.slane %v167_v0, 4  ;;  %196 = vst.msk [vmem:[#allocation4] sm:$0x3] %vm195_vm3, %v193_v1 }
 0x1b0   :  { %274 = shalt.err (!%p271_p4)
}
 0x1b1   :  { %s275_s5 = scalar_lea.hbm %s401_s4, 32 }
 0x1b2   :  { %p276_p5 = scmp.ne.s32.totalorder %s401_s4, %s275_s5  ;;  %p279_p6 = scmp.lt.u32.totalorder %s275_s5, %s401_s4 }
 0x1b4   :  { %p281_p7 = pnand %p279_p6, %p276_p5 }
 0x1b6   :  { %284 = shalt.err (!%p281_p7)
}
 0x1b7   :  { %216 = dma.vmem_to_hbm [thread:$0]  %s214_s2, 32, %s401_s4, [#allocation5]   ;;  %v164_v4 = vadd.f32 %v163_v2, %v162_v63  ;;  %v169_v5 = vadd.f32 %v168_v3, %v167_v0  ;;  %vm179_vm4 = vcmask 254976  }
 0x1b8   :  { %s312_s12 = smov [#allocation2]  }
 0x1b9   :  { %v170_v6 = vrot.slane %v169_v5, 2  ;;  %v165_v7 = vrot.slane %v164_v4, 1  ;;  %s203_s13 = sshll.u32 %s312_s12, 4  ;;  %s204_s13 = int_to_ptr.vmem [resolvable:$true] %s203_s13 }
 0x1ba   :  { %s285_s14 = scalar_lea.vmem %s204_s13, 32  ;;  %p290_p9 = scmp.lt.s32.totalorder %s204_s13, %s204_s13 }
 0x1bb   :  { %v171_v8 = vadd.f32 %v170_v6, %v169_v5  ;;  %v166_v10 = vadd.f32 %v165_v7, %v164_v4  ;;  %p286_p8 = scmp.ne.s32.totalorder %s204_s13, %s285_s14  ;;  %p291_p10 = scmp.lt.s32.totalorder %s285_s14, %s285_s14 }
 0x1bd   :  { %v172_v9 = vrot.slane %v171_v8, 1  ;;  %p292_p11 = por %p291_p10, %p290_p9 }
 0x1bf   :  { %v173_v11 = vadd.f32 %v172_v9, %v171_v8  ;;  %p293_p12 = pnand %p292_p11, %p286_p8 }
 0x1c1   :  { %v177_v12 = vsel %vm176_vm2, %v173_v11, %v166_v10 }
 0x1c2   :  { %180 = vst.msk [vmem:[#allocation2] sm:$0x3] %vm179_vm4, %v177_v12 }
 0x1c3   :  { %296 = shalt.err (!%p293_p12)
}
 0x1c4   :  { %s297_s16 = scalar_lea.hbm %s400_s3, 32 }
 0x1c5   :  { %p298_p13 = scmp.ne.s32.totalorder %s400_s3, %s297_s16  ;;  %p301_p0 = scmp.lt.u32.totalorder %s297_s16, %s400_s3 }
 0x1c7   :  { %p303_p1 = pnand %p301_p0, %p298_p13 }
 0x1c9   :  { %306 = shalt.err (!%p303_p1)
}
 0x1ca   :  { %206 = dma.vmem_to_hbm [thread:$0]  %s204_s13, 32, %s400_s3, [#allocation3]  }
 0x1cb   :  { %307 = dma.done.wait [#allocation3], 32  }
 0x1cc   :  { %308 = vsyncadd [#allocation3], 4294967264 }
 0x1cd   :  { %309 = dma.done.wait [#allocation5], 32  }
 0x1ce   :  { %310 = vsyncadd [#allocation5], 4294967264 }
 0x1cf   :  { %223 = vsyncpa [#allocation3], 1 }
 0x1d0   :  { %224 = vsyncpa [#allocation5], 1 }

</bundles_post_ra>
